<compile_context>
chip_gen: v7x
topology: tpu7x:2x2x1
jax: 0.10.0
libtpu: 0.0.40
codegen_flags: <defaults>
</compile_context>

<pallas_src>
import functools

import jax
import jax.numpy as jnp
from jax.experimental import pallas as pl
from jax.experimental.pallas import tpu as pltpu


H = 64             # hidden width of the MLP
_MAX_TB = 2048     # max folded-row tile (2048 x 256 lanes x 4B = 2 MiB per buffer)
_SPLIT_MIN = 256   # folded rows above which we force >= 2 grid steps (multi-TC parts)


def _round_up(n, m):
    return (n + m - 1) // m * m


def _pick_fold():
    """Batch rows folded into the lane axis: 4 on 256-wide-MXU parts (v6e/v7x), else 2."""
    try:
        kind = jax.devices()[0].device_kind.lower()
    except Exception:
        return 2
    return 4 if any(t in kind for t in ("v6", "v7", "tpu7")) else 2


def _block_diag(w, d_in_pad, d_out_pad, fold):
    """`fold` copies of `w` on the diagonal of a zero (fold*d_in_pad, fold*d_out_pad) slab."""
    d_in, d_out = w.shape
    out = jnp.zeros((fold * d_in_pad, fold * d_out_pad), jnp.float32)
    for r in range(fold):
        out = out.at[r * d_in_pad:r * d_in_pad + d_in,
                     r * d_out_pad:r * d_out_pad + d_out].set(w)
    return out


def _fold_bias(b, d_out_pad, fold):
    bp = jnp.zeros((d_out_pad,), jnp.float32).at[:b.shape[0]].set(b.reshape(-1))
    return jnp.tile(bp, fold).reshape(1, fold * d_out_pad)


def pack_controller_params(params, fold):
    """Pack [(W(in,out), b(out,)) x 4] into
         w1_fold: (fold*obs_dim, fold*H)  block-diagonal layer-1 weight
         wslab:   (3, fold*H, fold*H)     block-diagonal weights, layers 2..4
         bslab:   (4, 1, fold*H)          folded biases
    Zero padding is exact: zero weight rows/cols, zero bias, tanh(0)=0."""
    (w1, _) = params[0]
    w1_fold = _block_diag(w1, w1.shape[0], H, fold)
    wslab = jnp.stack([_block_diag(w, H, H, fold) for (w, _) in params[1:]])
    bslab = jnp.stack([_fold_bias(b, H, fold) for (_, b) in params])
    return w1_fold, wslab, bslab


def controller_kernel(x_ref, w1_ref, w_ref, b_ref, o_ref):
    """One folded batch tile through the whole MLP (4x MXU matmul + bias + tanh).

    x_ref:  (TB, fold*obs)   folded activation tile (streamed per grid step)
    w1_ref: (fold*obs, P)    layer-1 block-diag weight, VMEM-resident
    w_ref:  (3, P, P)        layer 2..4 block-diag weights, VMEM-resident
    b_ref:  (4, 1, P)        folded biases, VMEM-resident
    o_ref:  (TB, P)          folded output tile (lane-dense store)
    """
    h = jnp.tanh(
        jnp.dot(x_ref[...], w1_ref[...], preferred_element_type=jnp.float32)
        + b_ref[0])
    for l in range(w_ref.shape[0]):                 # static unroll (3 layers)
        h = jnp.tanh(
            jnp.dot(h, w_ref[l], preferred_element_type=jnp.float32)
            + b_ref[l + 1])
    o_ref[...] = h.astype(o_ref.dtype)


@functools.partial(jax.jit, static_argnames=("act_dim",))
def controller_forward(x, w1_fold, wslab, bslab, *, act_dim):
    """x: (B, obs_dim) f32.  Returns (B, act_dim) f32."""
    B, obs_dim = x.shape
    fold = w1_fold.shape[0] // obs_dim
    pw = wslab.shape[-1]                 # fold * H : lane width of activations
    fin = fold * obs_dim                 # lane width of the folded input

    # --- tile / grid selection (all static under jit) -------------------------
    fb = pl.cdiv(B, fold)                        # folded rows needed
    n_steps = max(1, pl.cdiv(fb, _MAX_TB))       # soft cap on tile size
    if n_steps == 1 and fb >= _SPLIT_MIN:
        n_steps = 2                              # let both v7x TensorCores work
    tb = _round_up(pl.cdiv(fb, n_steps), 8)      # f32 sublane multiple
    fb_pad = tb * n_steps
    rows_pad = fb_pad * fold

    # --- fold batch rows into lanes (free reshape; pad rows only if needed) ---
    if rows_pad != B:
        x = jnp.pad(x, ((0, rows_pad - B), (0, 0)))
    x_fold = x.reshape(fb_pad, fin)

    out = pl.pallas_call(
        controller_kernel,
        out_shape=jax.ShapeDtypeStruct((fb_pad, pw), jnp.float32),
        grid=(n_steps,),
        in_specs=[
            pl.BlockSpec((tb, fin), lambda i: (i, 0)),        # x: streamed per tile
            pl.BlockSpec(w1_fold.shape, lambda i: (0, 0)),    # layer-1 W: resident
            pl.BlockSpec(wslab.shape, lambda i: (0, 0, 0)),   # layers 2-4 W: resident
            pl.BlockSpec(bslab.shape, lambda i: (0, 0, 0)),   # biases: resident
        ],
        out_specs=pl.BlockSpec((tb, pw), lambda i: (i, 0)),
        compiler_params=pltpu.CompilerParams(
            dimension_semantics=("parallel",)),               # shard grid across TCs
    )(x_fold, w1_fold, wslab, bslab)

    # un-fold lanes back to batch rows and drop all padding
    out = out.reshape(rows_pad, pw // fold)
    return out[:B, :act_dim]


def init_controller_params(key, obs_dim, act_dim, h_size=H):
    """Mirror init_t_: orthogonal(gain=calculate_gain('tanh')=5/3) weights, zero bias.
    Weights are stored as (in, out) = W_pytorch.T for the x @ W layout."""
    gain = 5.0 / 3.0
    orth = jax.nn.initializers.orthogonal(scale=gain)
    dims = [(obs_dim, h_size), (h_size, h_size), (h_size, h_size), (h_size, act_dim)]
    params = []
    for k, (d_in, d_out) in zip(jax.random.split(key, len(dims)), dims):
        w_pt = orth(k, (d_out, d_in), jnp.float32)     # PyTorch-shaped (out, in)
        params.append((w_pt.T, jnp.zeros((d_out,), jnp.float32)))
    return params


def controller_reference(x, params):
    h = x
    for w, b in params:
        h = jnp.tanh(jnp.dot(h, w, precision=jax.lax.Precision.HIGHEST) + b)
    return h


if __name__ == "__main__":
    key = jax.random.PRNGKey(0)
    k_param, k_x1, k_x2, k_x3 = jax.random.split(key, 4)

    obs_dim = 16   # observation_dim[0]
    act_dim = 4    # action_dim.shape[0]

    fold = _pick_fold()
    params = init_controller_params(k_param, obs_dim, act_dim)
    w1_fold, wslab, bslab = pack_controller_params(params, fold)

    def run_and_check(k, batch):
        x = jax.random.normal(k, (batch, obs_dim), dtype=jnp.float32)
        out = jax.block_until_ready(
            controller_forward(x, w1_fold, wslab, bslab, act_dim=act_dim))
        ref = controller_reference(x, params)
        assert out.shape == (batch, act_dim)
        assert jnp.allclose(out, ref, atol=1e-4, rtol=1e-4), \
            f"mismatch vs reference (batch={batch})"

    run_and_check(k_x1, 8)       # tiny batch: single grid step, padded rows
    run_and_check(k_x2, 600)     # ragged batch: minimal-padding tiling path
    run_and_check(k_x3, 2048)    # exact multiple: no pad op, >= 2 grid steps

    print("KERNEL_OK")
</pallas_src>

<mosaic_0001>
module attributes {stable_mosaic.version = 11 : i64} {
  func.func @controller_kernel(%arg0: i32, %arg1: memref<8x32xf32, #tpu.memory_space<vmem>>, %arg2: memref<32x128xf32, #tpu.memory_space<vmem>>, %arg3: memref<3x128x128xf32, #tpu.memory_space<vmem>>, %arg4: memref<4x1x128xf32, #tpu.memory_space<vmem>>, %arg5: memref<8x128xf32, #tpu.memory_space<vmem>>) attributes {dimension_semantics = [#tpu.dimension_semantics<parallel>], iteration_bounds = array<i64: 1>, scalar_prefetch = 0 : i64, scratch_operands = 0 : i64, tpu.core_type = #tpu.core_type<tc>, window_params = [{transform_indices = @transform_0, window_bounds = array<i64: 8, 32>}, {pipeline_mode = #tpu.pipeline_mode<synchronous>, transform_indices = @transform_1, window_bounds = array<i64: 32, 128>}, {pipeline_mode = #tpu.pipeline_mode<synchronous>, transform_indices = @transform_2, window_bounds = array<i64: 3, 128, 128>}, {pipeline_mode = #tpu.pipeline_mode<synchronous>, transform_indices = @transform_3, window_bounds = array<i64: 4, 1, 128>}, {transform_indices = @transform_4, window_bounds = array<i64: 8, 128>}]} {
    %c0 = arith.constant 0 : index
    %c0_0 = arith.constant 0 : index
    %0 = vector.load %arg1[%c0, %c0_0] : memref<8x32xf32, #tpu.memory_space<vmem>>, vector<8x32xf32>
    %c0_1 = arith.constant 0 : index
    %c0_2 = arith.constant 0 : index
    %1 = vector.load %arg2[%c0_1, %c0_2] : memref<32x128xf32, #tpu.memory_space<vmem>>, vector<32x128xf32>
    %cst = arith.constant dense<0.000000e+00> : vector<8x128xf32>
    %2 = tpu.matmul %0, %1, %cst {dimension_numbers = #tpu.dot_dimension_numbers<[1], [0], [0], [1], [0, 0, 1, 1], [], []>} : vector<8x32xf32>, vector<32x128xf32>, vector<8x128xf32> -> vector<8x128xf32>
    %c0_3 = arith.constant 0 : index
    %c0_4 = arith.constant 0 : index
    %c0_5 = arith.constant 0 : index
    %3 = vector.load %arg4[%c0_3, %c0_4, %c0_5] : memref<4x1x128xf32, #tpu.memory_space<vmem>>, vector<1x1x128xf32>
    %4 = vector.shape_cast %3 : vector<1x1x128xf32> to vector<1x128xf32>
    %5 = vector.broadcast %4 : vector<1x128xf32> to vector<8x128xf32>
    %6 = arith.addf %2, %5 : vector<8x128xf32>
    %7 = math.tanh %6 : vector<8x128xf32>
    %c0_6 = arith.constant 0 : index
    %c0_7 = arith.constant 0 : index
    %c0_8 = arith.constant 0 : index
    %8 = vector.load %arg3[%c0_6, %c0_7, %c0_8] : memref<3x128x128xf32, #tpu.memory_space<vmem>>, vector<1x128x128xf32>
    %9 = vector.shape_cast %8 : vector<1x128x128xf32> to vector<128x128xf32>
    %cst_9 = arith.constant dense<0.000000e+00> : vector<8x128xf32>
    %10 = tpu.matmul %7, %9, %cst_9 {dimension_numbers = #tpu.dot_dimension_numbers<[1], [0], [0], [1], [0, 0, 1, 1], [], []>} : vector<8x128xf32>, vector<128x128xf32>, vector<8x128xf32> -> vector<8x128xf32>
    %c1 = arith.constant 1 : index
    %c0_10 = arith.constant 0 : index
    %c0_11 = arith.constant 0 : index
    %11 = vector.load %arg4[%c1, %c0_10, %c0_11] : memref<4x1x128xf32, #tpu.memory_space<vmem>>, vector<1x1x128xf32>
    %12 = vector.shape_cast %11 : vector<1x1x128xf32> to vector<1x128xf32>
    %13 = vector.broadcast %12 : vector<1x128xf32> to vector<8x128xf32>
    %14 = arith.addf %10, %13 : vector<8x128xf32>
    %15 = math.tanh %14 : vector<8x128xf32>
    %c1_12 = arith.constant 1 : index
    %c0_13 = arith.constant 0 : index
    %c0_14 = arith.constant 0 : index
    %16 = vector.load %arg3[%c1_12, %c0_13, %c0_14] : memref<3x128x128xf32, #tpu.memory_space<vmem>>, vector<1x128x128xf32>
    %17 = vector.shape_cast %16 : vector<1x128x128xf32> to vector<128x128xf32>
    %cst_15 = arith.constant dense<0.000000e+00> : vector<8x128xf32>
    %18 = tpu.matmul %15, %17, %cst_15 {dimension_numbers = #tpu.dot_dimension_numbers<[1], [0], [0], [1], [0, 0, 1, 1], [], []>} : vector<8x128xf32>, vector<128x128xf32>, vector<8x128xf32> -> vector<8x128xf32>
    %c2 = arith.constant 2 : index
    %c0_16 = arith.constant 0 : index
    %c0_17 = arith.constant 0 : index
    %19 = vector.load %arg4[%c2, %c0_16, %c0_17] : memref<4x1x128xf32, #tpu.memory_space<vmem>>, vector<1x1x128xf32>
    %20 = vector.shape_cast %19 : vector<1x1x128xf32> to vector<1x128xf32>
    %21 = vector.broadcast %20 : vector<1x128xf32> to vector<8x128xf32>
    %22 = arith.addf %18, %21 : vector<8x128xf32>
    %23 = math.tanh %22 : vector<8x128xf32>
    %c2_18 = arith.constant 2 : index
    %c0_19 = arith.constant 0 : index
    %c0_20 = arith.constant 0 : index
    %24 = vector.load %arg3[%c2_18, %c0_19, %c0_20] : memref<3x128x128xf32, #tpu.memory_space<vmem>>, vector<1x128x128xf32>
    %25 = vector.shape_cast %24 : vector<1x128x128xf32> to vector<128x128xf32>
    %cst_21 = arith.constant dense<0.000000e+00> : vector<8x128xf32>
    %26 = tpu.matmul %23, %25, %cst_21 {dimension_numbers = #tpu.dot_dimension_numbers<[1], [0], [0], [1], [0, 0, 1, 1], [], []>} : vector<8x128xf32>, vector<128x128xf32>, vector<8x128xf32> -> vector<8x128xf32>
    %c3 = arith.constant 3 : index
    %c0_22 = arith.constant 0 : index
    %c0_23 = arith.constant 0 : index
    %27 = vector.load %arg4[%c3, %c0_22, %c0_23] : memref<4x1x128xf32, #tpu.memory_space<vmem>>, vector<1x1x128xf32>
    %28 = vector.shape_cast %27 : vector<1x1x128xf32> to vector<1x128xf32>
    %29 = vector.broadcast %28 : vector<1x128xf32> to vector<8x128xf32>
    %30 = arith.addf %26, %29 : vector<8x128xf32>
    %31 = math.tanh %30 : vector<8x128xf32>
    %c0_24 = arith.constant 0 : index
    %c0_25 = arith.constant 0 : index
    %32 = vector.load %arg5[%c0_24, %c0_25] : memref<8x128xf32, #tpu.memory_space<vmem>>, vector<8x128xf32>
    tpu.vector_store %arg5[%c0_24, %c0_25], %31 {strides = array<i32>} : memref<8x128xf32, #tpu.memory_space<vmem>>, vector<8x128xf32>,
    return
  }
  func.func @transform_0(%arg0: i32) -> (i32, i32) {
    %c0_i32 = arith.constant 0 : i32
    %c0_i32_0 = arith.constant 0 : i32
    return %arg0, %c0_i32 : i32, i32
  }
  func.func @transform_1(%arg0: i32) -> (i32, i32) {
    %c0_i32 = arith.constant 0 : i32
    %c0_i32_0 = arith.constant 0 : i32
    %c0_i32_1 = arith.constant 0 : i32
    return %c0_i32, %c0_i32_0 : i32, i32
  }
  func.func @transform_2(%arg0: i32) -> (i32, i32, i32) {
    %c0_i32 = arith.constant 0 : i32
    %c0_i32_0 = arith.constant 0 : i32
    %c0_i32_1 = arith.constant 0 : i32
    %c0_i32_2 = arith.constant 0 : i32
    return %c0_i32, %c0_i32_0, %c0_i32_1 : i32, i32, i32
  }
  func.func @transform_3(%arg0: i32) -> (i32, i32, i32) {
    %c0_i32 = arith.constant 0 : i32
    %c0_i32_0 = arith.constant 0 : i32
    %c0_i32_1 = arith.constant 0 : i32
    %c0_i32_2 = arith.constant 0 : i32
    return %c0_i32, %c0_i32_0, %c0_i32_1 : i32, i32, i32
  }
  func.func @transform_4(%arg0: i32) -> (i32, i32) {
    %c0_i32 = arith.constant 0 : i32
    %c0_i32_0 = arith.constant 0 : i32
    return %arg0, %c0_i32 : i32, i32
  }
}

</mosaic_0001>

<bundles_post_ra>
// kernel: controller_forward.1
= control target key start
LH: loop header
LB: loop body
LE: loop exit
PB: predicated region body
PF: predicated region fallthrough
CT: control target
= control target key end

     0   :  { %9 = vsyncpa [#allocation3], 0  ;;  %s707_s15 = smov [#allocation2]   ;;  %s814_s0 = inlined_call_operand.vmem [shape: f32[8,32], index: 0, kind: input, shape index: {}]   ;;  %s815_s1 = inlined_call_operand.vmem [shape: f32[32,128], index: 1, kind: input, shape index: {}]   ;;  %s816_s2 = inlined_call_operand.hbm [shape: f32[3,128,128], index: 2, kind: input, shape index: {}]   ;;  %s817_s3 = inlined_call_operand.vmem [shape: f32[4,1,128], index: 3, kind: input, shape index: {}]   ;;  %s818_s4 = inlined_call_operand.vmem [shape: f32[8,128], index: 4, kind: output, shape index: {}]  }
   0x1   :  { %s19_s16 = sshll.u32 %s707_s15, 4  ;;  %s683_s19 = scalar_lea.hbm %s816_s2, 6144  ;;  %s20_s16 = int_to_ptr.vmem [resolvable:$true] %s19_s16 }
   0x2   :  { %p684_p0 = scmp.ne.s32.totalorder %s816_s2, %s683_s19  ;;  %p687_p1 = scmp.lt.u32.totalorder %s683_s19, %s816_s2 }
   0x4   :  { %p689_p2 = pnand %p687_p1, %p684_p0 }
   0x6   :  { %692 = shalt.err (!%p689_p2)
}
   0x7   :  { %s693_s24 = scalar_lea.vmem %s20_s16, 6144  ;;  %p698_p4 = scmp.lt.s32.totalorder %s20_s16, %s20_s16 }
   0x8   :  { %p694_p3 = scmp.ne.s32.totalorder %s20_s16, %s693_s24  ;;  %p699_p5 = scmp.lt.s32.totalorder %s693_s24, %s693_s24 }
   0xa   :  { %p700_p6 = por %p699_p5, %p698_p4 }
   0xc   :  { %p701_p7 = pnand %p700_p6, %p694_p3 }
   0xe   :  { %704 = shalt.err (!%p701_p7)
}
   0xf   :  { %s708_s25 = smov 128   ;;  %s709_s26 = smov 8  }
  0x10   :  { %25 = dma.hbm_to_vmem [thread:$0]  %s816_s2, 6144, %s20_s16, [#allocation3], %s708_s25, %s708_s25, %s709_s26  }
  0x11   :  { %705 = dma.done.wait [#allocation3], 6144  }
  0x12   :  { %706 = vsyncadd [#allocation3], 4294961152  ;;  %v710_v0 = vmov 0.0|0.0   ;;  %vm711_vm0 = vmmov 0   ;;  %v712_v1 = vmov 0.0   ;;  %v32_v2 = vld [vmem:[%s815_s1] sm:$0xff] }
  0x13   :  { %591 = vmatprep.subr.bf16.mxu0 %v710_v0  ;;  %483 = vmatprep.mubr.msk.f32.mxu0 %vm711_vm0, %v712_v1  ;;  %v33_v3 = vld [vmem:[%s815_s1 + $0x8] sm:$0xff]  ;;  %v34_v4 = vld [vmem:[%s815_s1 + $0x10] sm:$0xff]  ;;  %v35_v6 = vld [vmem:[%s815_s1 + $0x18] sm:$0xff]  ;;  %vm43_vm1 = vcmask 261120  }
  0x14   :  { %597 = vmatprep.subr.bf16.mxu1 %v710_v0  ;;  %518 = vmatprep.mubr.msk.f32.mxu1 %vm711_vm0, %v712_v1  ;;  %v592_v5 = vpack.c.bf16 %v33_v3, %v32_v2  ;;  %v118_v7 = vld [vmem:[#allocation2] sm:$0xff]  ;;  %v119_v8 = vld [vmem:[#allocation2 + $0x8] sm:$0xff]  ;;  %v120_v9 = vld [vmem:[#allocation2 + $0x10] sm:$0xff]  ;;  %v595_v11 = vpack.c.bf16 %v35_v6, %v34_v4 }
  0x15   :  { %v121_v10 = vld [vmem:[#allocation2 + $0x18] sm:$0xff]  ;;  %v598_v12 = vpack.c.bf16 %v119_v8, %v118_v7  ;;  %v122_v14 = vld [vmem:[#allocation2 + $0x20] sm:$0xff]  ;;  %v123_v15 = vld [vmem:[#allocation2 + $0x28] sm:$0xff] }
  0x16   :  { %593 = vmatpush3.bf16.msra.mxu0 %v592_v5  ;;  %v601_v13 = vpack.c.bf16 %v121_v10, %v120_v9  ;;  %v31_v16 = vld [vmem:[%s814_s0] sm:$0xff]  ;;  %v604_v17 = vpack.c.bf16 %v123_v15, %v122_v14  ;;  %v124_v18 = vld [vmem:[#allocation2 + $0x30] sm:$0xff]  ;;  %v125_v19 = vld [vmem:[#allocation2 + $0x38] sm:$0xff] }
  0x17   :  { %594 = vmatprep.subr.bf16.mxu0 %v710_v0  ;;  %599 = vmatpush3.bf16.msra.mxu1 %v598_v12  ;;  %v607_v20 = vpack.c.bf16 %v125_v19, %v124_v18  ;;  %v126_v21 = vld [vmem:[#allocation2 + $0x40] sm:$0xff]  ;;  %v127_v22 = vld [vmem:[#allocation2 + $0x48] sm:$0xff]  ;;  %v128_v24 = vld [vmem:[#allocation2 + $0x50] sm:$0xff] }
  0x18   :  { %600 = vmatprep.subr.bf16.mxu1 %v710_v0  ;;  %v610_v23 = vpack.c.bf16 %v127_v22, %v126_v21  ;;  %v129_v25 = vld [vmem:[#allocation2 + $0x58] sm:$0xff]  ;;  %v130_v27 = vld [vmem:[#allocation2 + $0x60] sm:$0xff]  ;;  %v131_v28 = vld [vmem:[#allocation2 + $0x68] sm:$0xff] }
  0x19   :  { %v613_v26 = vpack.c.bf16 %v129_v25, %v128_v24  ;;  %v616_v29 = vpack.c.bf16 %v131_v28, %v130_v27  ;;  %v132_v30 = vld [vmem:[#allocation2 + $0x70] sm:$0xff]  ;;  %v133_v31 = vld [vmem:[#allocation2 + $0x78] sm:$0xff]  ;;  %v214_v33 = vld [vmem:[#allocation2 + $0x80] sm:$0xff] }
  0x1a   :  { %596 = vmatpush3.bf16.msra.mxu0 %v595_v11  ;;  %v619_v32 = vpack.c.bf16 %v133_v31, %v132_v30  ;;  %v215_v34 = vld [vmem:[#allocation2 + $0x88] sm:$0xff]  ;;  %v216_v35 = vld [vmem:[#allocation2 + $0x90] sm:$0xff]  ;;  %v217_v37 = vld [vmem:[#allocation2 + $0x98] sm:$0xff] }
  0x1b   :  { %621 = vmatprep.subr.bf16.mxu0 %v710_v0  ;;  %602 = vmatpush3.bf16.msra.mxu1 %v601_v13  ;;  %v622_v36 = vpack.c.bf16 %v215_v34, %v214_v33  ;;  %v625_v38 = vpack.c.bf16 %v217_v37, %v216_v35  ;;  %v218_v39 = vld [vmem:[#allocation2 + $0xa0] sm:$0xff]  ;;  %v219_v40 = vld [vmem:[#allocation2 + $0xa8] sm:$0xff]  ;;  %v220_v42 = vld [vmem:[#allocation2 + $0xb0] sm:$0xff] }
  0x1c   :  { %603 = vmatprep.subr.bf16.mxu1 %v710_v0  ;;  %v628_v41 = vpack.c.bf16 %v219_v40, %v218_v39  ;;  %v221_v43 = vld [vmem:[#allocation2 + $0xb8] sm:$0xff]  ;;  %v222_v45 = vld [vmem:[#allocation2 + $0xc0] sm:$0xff]  ;;  %v223_v46 = vld [vmem:[#allocation2 + $0xc8] sm:$0xff] }
  0x1d   :  { %484 = vmatmul.mubr.msk.f32.vlgmr.msra.gmra.mrb[0].mxu0 %vm43_vm1, %v31_v16  ;;  %v631_v44 = vpack.c.bf16 %v221_v43, %v220_v42  ;;  %v634_v47 = vpack.c.bf16 %v223_v46, %v222_v45  ;;  %v411_v48 = vld [vmem:[%s817_s3] ss:$0 sm:$0xff]  ;;  %v224_v53 = vld [vmem:[#allocation2 + $0xd0] sm:$0xff]  ;;  %v225_v54 = vld [vmem:[#allocation2 + $0xd8] sm:$0xff] }
  0x1e   :  { %553 = vmatprep.mubr.msk.f32.mxu0 %vm711_vm0, %v712_v1  ;;  %623 = vmatpush3.bf16.msra.mxu0 %v622_v36  ;;  %v637_v55 = vpack.c.bf16 %v225_v54, %v224_v53  ;;  %v226_v56 = vld [vmem:[#allocation2 + $0xe0] sm:$0xff]  ;;  %v227_v57 = vld [vmem:[#allocation2 + $0xe8] sm:$0xff]  ;;  %v228_v59 = vld [vmem:[#allocation2 + $0xf0] sm:$0xff] }
  0x1f   :  { %605 = vmatpush3.bf16.msra.mxu1 %v604_v17  ;;  %624 = vmatprep.subr.bf16.mxu0 %v710_v0  ;;  %v640_v58 = vpack.c.bf16 %v227_v57, %v226_v56  ;;  %v229_v60 = vld [vmem:[#allocation2 + $0xf8] sm:$0xff]  ;;  %v310_v62 = vld [vmem:[#allocation2 + $0x100] sm:$0xff]  ;;  %v311_v63 = vld [vmem:[#allocation2 + $0x108] sm:$0xff] }
  0x20   :  { %606 = vmatprep.subr.bf16.mxu1 %v710_v0  ;;  %v643_v61 = vpack.c.bf16 %v229_v60, %v228_v59  ;;  %v312_v2 = vld [vmem:[#allocation2 + $0x110] sm:$0xff]  ;;  %v313_v3 = vld [vmem:[#allocation2 + $0x118] sm:$0xff]  ;;  %v314_v5 = vld [vmem:[#allocation2 + $0x120] sm:$0xff] }
  0x21   :  { %v649_v4 = vpack.c.bf16 %v313_v3, %v312_v2  ;;  %v315_v6 = vld [vmem:[#allocation2 + $0x128] sm:$0xff]  ;;  %v316_v8 = vld [vmem:[#allocation2 + $0x130] sm:$0xff]  ;;  %v317_v9 = vld [vmem:[#allocation2 + $0x138] sm:$0xff] }
  0x22   :  { %626 = vmatpush3.bf16.msra.mxu0 %v625_v38  ;;  %v652_v7 = vpack.c.bf16 %v315_v6, %v314_v5  ;;  %v655_v10 = vpack.c.bf16 %v317_v9, %v316_v8  ;;  %v318_v11 = vld [vmem:[#allocation2 + $0x140] sm:$0xff]  ;;  %v319_v12 = vld [vmem:[#allocation2 + $0x148] sm:$0xff]  ;;  %v320_v19 = vld [vmem:[#allocation2 + $0x150] sm:$0xff] }
  0x23   :  { %608 = vmatpush3.bf16.msra.mxu1 %v607_v20  ;;  %627 = vmatprep.subr.bf16.mxu0 %v710_v0  ;;  %v658_v13 = vpack.c.bf16 %v319_v12, %v318_v11  ;;  %v414_v14 = vld [vmem:[%s817_s3 + $0x1] ss:$0 sm:$0xff]  ;;  %v321_v20 = vld [vmem:[#allocation2 + $0x158] sm:$0xff]  ;;  %v324_v25 = vld [vmem:[#allocation2 + $0x170] sm:$0xff] }
  0x24   :  { %609 = vmatprep.subr.bf16.mxu1 %v710_v0  ;;  %v661_v21 = vpack.c.bf16 %v321_v20, %v320_v19  ;;  %v322_v22 = vld [vmem:[#allocation2 + $0x160] sm:$0xff] }
  0x25   :  { %v416_v28 = vld [vmem:[%s817_s3 + $0x2] ss:$0 sm:$0xff]  ;;  %v418_v33 = vld [vmem:[%s817_s3 + $0x3] ss:$0 sm:$0xff] }
  0x26   :  { %629 = vmatpush3.bf16.msra.mxu0 %v628_v41 }
  0x27   :  { %611 = vmatpush3.bf16.msra.mxu1 %v610_v23  ;;  %630 = vmatprep.subr.bf16.mxu0 %v710_v0  ;;  %v323_v23 = vld [vmem:[#allocation2 + $0x168] sm:$0xff] }
  0x28   :  { %612 = vmatprep.subr.bf16.mxu1 %v710_v0  ;;  %v664_v24 = vpack.c.bf16 %v323_v23, %v322_v22 }
  0x2a   :  { %632 = vmatpush3.bf16.msra.mxu0 %v631_v44 }
  0x2b   :  { %614 = vmatpush3.bf16.msra.mxu1 %v613_v26  ;;  %633 = vmatprep.subr.bf16.mxu0 %v710_v0  ;;  %v325_v26 = vld [vmem:[#allocation2 + $0x178] sm:$0xff] }
  0x2c   :  { %615 = vmatprep.subr.bf16.mxu1 %v710_v0  ;;  %v667_v27 = vpack.c.bf16 %v325_v26, %v324_v25 }
  0x2e   :  { %635 = vmatpush3.bf16.msra.mxu0 %v634_v47 }
  0x2f   :  { %617 = vmatpush3.bf16.msra.mxu1 %v616_v29  ;;  %636 = vmatprep.subr.bf16.mxu0 %v710_v0 }
  0x30   :  { %618 = vmatprep.subr.bf16.mxu1 %v710_v0 }
  0x32   :  { %638 = vmatpush3.bf16.msra.mxu0 %v637_v55 }
  0x33   :  { %620 = vmatpush3.bf16.msra.mxu1 %v619_v32  ;;  %639 = vmatprep.subr.bf16.mxu0 %v710_v0 }
  0x34   :  { %645 = vmatprep.subr.bf16.mxu1 %v710_v0 }
  0x36   :  { %641 = vmatpush3.bf16.msra.mxu0 %v640_v58 }
  0x37   :  { %642 = vmatprep.subr.bf16.mxu0 %v710_v0 }
  0x3a   :  { %644 = vmatpush3.bf16.msra.mxu0 %v643_v61 }
  0xf0   :  { %v113_v49 = vpop.f32.mrb[0].mxu0 }
  0xf1   :  { %v114_v50 = vadd.f32 %v411_v48, %v113_v49  ;;  %v485_v51 = vpop.f32.mrb[1].mxu0 }
  0xf3   :  { %675 = vtanh.f32 %v114_v50 }
  0xfd   :  { %v676_v52 = vpop.eup %675 }
  0xfe   :  { %519 = vmatmul.mubr.f32.vlgmr.msra.gmra.mrb[0].mxu1 %v676_v52 }
  0xff   :  { %588 = vmatprep.mubr.msk.f32.mxu1 %vm711_vm0, %v712_v1  ;;  %v646_v1 = vpack.c.bf16 %v311_v63, %v310_v62 }
 0x101   :  { %647 = vmatpush3.bf16.msra.mxu1 %v646_v1 }
 0x102   :  { %648 = vmatprep.subr.bf16.mxu1 %v710_v0 }
 0x105   :  { %650 = vmatpush3.bf16.msra.mxu1 %v649_v4 }
 0x106   :  { %651 = vmatprep.subr.bf16.mxu1 %v710_v0 }
 0x109   :  { %653 = vmatpush3.bf16.msra.mxu1 %v652_v7 }
 0x10a   :  { %654 = vmatprep.subr.bf16.mxu1 %v710_v0 }
 0x10d   :  { %656 = vmatpush3.bf16.msra.mxu1 %v655_v10 }
 0x10e   :  { %657 = vmatprep.subr.bf16.mxu1 %v710_v0 }
 0x111   :  { %659 = vmatpush3.bf16.msra.mxu1 %v658_v13 }
 0x112   :  { %660 = vmatprep.subr.bf16.mxu1 %v710_v0 }
 0x115   :  { %662 = vmatpush3.bf16.msra.mxu1 %v661_v21 }
 0x116   :  { %663 = vmatprep.subr.bf16.mxu1 %v710_v0 }
 0x119   :  { %665 = vmatpush3.bf16.msra.mxu1 %v664_v24 }
 0x11a   :  { %666 = vmatprep.subr.bf16.mxu1 %v710_v0 }
 0x11d   :  { %668 = vmatpush3.bf16.msra.mxu1 %v667_v27 }
 0x1d1   :  { %v208_v15 = vpop.f32.mrb[0].mxu1 }
 0x1d2   :  { %v209_v16 = vadd.f32 %v414_v14, %v208_v15  ;;  %v520_v17 = vpop.f32.mrb[1].mxu1 }
 0x1d4   :  { %677 = vtanh.f32 %v209_v16 }
 0x1de   :  { %v678_v18 = vpop.eup %677 }
 0x1df   :  { %554 = vmatmul.mubr.f32.vlgmr.msra.gmra.mrb[2].mxu0 %v678_v18 }
 0x2b2   :  { %v304_v29 = vpop.f32.mrb[2].mxu0 }
 0x2b3   :  { %v305_v30 = vadd.f32 %v416_v28, %v304_v29  ;;  %v555_v31 = vpop.f32.mrb[3].mxu0 }
 0x2b5   :  { %679 = vtanh.f32 %v305_v30 }
 0x2bf   :  { %v680_v32 = vpop.eup %679 }
 0x2c0   :  { %589 = vmatmul.mubr.f32.vlgmr.msra.gmra.mrb[2].mxu1 %v680_v32 }
 0x393   :  { %v400_v34 = vpop.f32.mrb[2].mxu1 }
 0x394   :  { %v401_v35 = vadd.f32 %v418_v33, %v400_v34  ;;  %v590_v36 = vpop.f32.mrb[3].mxu1 }
 0x396   :  { %681 = vtanh.f32 %v401_v35 }
 0x3a0   :  { %v682_v0 = vpop.eup %681 }
 0x3a1   :  { %405 = vst [vmem:[%s818_s4] sm:$0xff] %v682_v0 }
 0x3a2   :  { %410 = vsyncpa [#allocation3], 1 }

</bundles_post_ra>
